<compile_context>
chip_gen: v7x
topology: tpu7x:2x2x1
jax: 0.10.0
libtpu: 0.0.40
codegen_flags: <defaults>
</compile_context>

<pallas_src>
from functools import partial
from collections import OrderedDict

import jax
import jax.numpy as jnp
from jax import lax
from jax.experimental import pallas as pl
from jax.experimental.pallas import tpu as pltpu  # noqa: F401  (TPU backend)


def _round_up(n, m):
    return ((n + m - 1) // m) * m


def _bc_forward_loss_kernel(B, A, Kx, C, l2_w, l1_w, cos_w,
                            p_ref, x_ref, act_ref,
                            pred_ref, loss_ref):
    # ---- unpack the single parameter slab (static, 8-aligned row offsets) ----
    w1 = p_ref[0:Kx, :]                                # (Kx, C)  rows >= d_in are 0
    b1 = p_ref[Kx:Kx + 1, :]                           # (1, C)
    w2 = p_ref[Kx + 8:Kx + 8 + C, :]                   # (C, C)   rows >= h1 are 0
    b2 = p_ref[Kx + 8 + C:Kx + 9 + C, :]               # (1, C)
    w3 = p_ref[Kx + 16 + C:Kx + 16 + 2 * C, :]         # (C, C)   cols >= A are 0
    b3 = p_ref[Kx + 16 + 2 * C:Kx + 17 + 2 * C, :]     # (1, C)

    x = x_ref[...]                                     # (B, Kx) zero-padded past d_in
    act = act_ref[...]                                 # (B, C)  zero-padded past A

    # ---- ActorNetwork (MIMO_MLP): Linear->ReLU->Linear->ReLU->Linear->tanh ----
    h1 = jnp.maximum(jnp.dot(x, w1, preferred_element_type=jnp.float32) + b1, 0.0)
    h2 = jnp.maximum(jnp.dot(h1, w2, preferred_element_type=jnp.float32) + b2, 0.0)
    pred = jnp.tanh(jnp.dot(h2, w3, preferred_element_type=jnp.float32) + b3)  # (B, C)
    pred_ref[...] = pred.astype(pred_ref.dtype)        # lane-padded slab; cols >= A are exactly 0

    # Padded lanes are exactly 0 in both pred and act -> whole-tile sums are the
    # true sums; divide by the *logical* element counts.
    diff = pred - act
    inv_ba = 1.0 / float(B * A)
    inv_b = 1.0 / float(B)

    # --- MSELoss (mean) ---
    l2 = jnp.sum(diff * diff, keepdims=True) * inv_ba                    # (1, 1)

    # --- SmoothL1Loss (beta = 1.0, mean); padded lanes contribute exactly 0 ---
    ad = jnp.abs(diff)
    l1 = jnp.sum(jnp.where(ad < 1.0, 0.5 * diff * diff, ad - 0.5),
                 keepdims=True) * inv_ba                                  # (1, 1)

    # --- cosine loss on the first 3 action dims (lane mask, no narrow slices) ---
    lane = lax.broadcasted_iota(jnp.int32, (B, C), 1)
    m3 = lane < 3
    pt = jnp.sum(jnp.where(m3, pred * act, 0.0), axis=-1, keepdims=True)  # (B, 1)
    pp = jnp.sum(jnp.where(m3, pred * pred, 0.0), axis=-1, keepdims=True)
    tt = jnp.sum(jnp.where(m3, act * act, 0.0), axis=-1, keepdims=True)
    eps2 = 1e-16  # (1e-8)^2 -> identical clamp to max(||.||, 1e-8) in the reference
    sim = pt * lax.rsqrt(jnp.maximum(pp, eps2)) * lax.rsqrt(jnp.maximum(tt, eps2))
    cos = jnp.sum(1.0 - sim, keepdims=True) * inv_b                       # (1, 1)

    total = l2_w * l2 + l1_w * l1 + cos_w * cos

    # single merged scalar-loss output: [l2, l1, cos, total]
    lane4 = lax.broadcasted_iota(jnp.int32, (1, 4), 1)
    loss_ref[...] = (jnp.where(lane4 == 0, l2, 0.0)
                     + jnp.where(lane4 == 1, l1, 0.0)
                     + jnp.where(lane4 == 2, cos, 0.0)
                     + jnp.where(lane4 == 3, total, 0.0))


def _pack_params(params, C, Kx):
    """Pack (w1,b1,w2,b2,w3,b3) into one (Kx + 2C + 24, C) slab, 8-row aligned.

    Weights are stored (in_features, out_features), i.e. the transpose of
    PyTorch nn.Linear's convention, so the kernel computes x @ W + b directly.
    In a training loop this packing is done once per parameter update, not per
    forward call.
    """
    w1, b1, w2, b2, w3, b3 = params
    d_in, h1 = w1.shape
    _, h2 = w2.shape
    _, a = w3.shape
    R = Kx + 2 * C + 24
    buf = jnp.zeros((R, C), jnp.float32)
    buf = buf.at[0:d_in, 0:h1].set(w1)
    buf = buf.at[Kx, 0:h1].set(b1.reshape(-1))
    buf = buf.at[Kx + 8:Kx + 8 + h1, 0:h2].set(w2)
    buf = buf.at[Kx + 8 + C, 0:h2].set(b2.reshape(-1))
    buf = buf.at[Kx + 16 + C:Kx + 16 + C + h2, 0:a].set(w3)
    buf = buf.at[Kx + 16 + 2 * C, 0:a].set(b3.reshape(-1))
    return buf


def bc_forward(x, params, actions, loss_weights):
    """x: [B, D_in] concatenated low-dim obs; actions: [B, ac_dim].

    Returns (actions_pred [B, ac_dim], l2_loss, l1_loss, cos_loss, total_loss).
    """
    w1, b1, w2, b2, w3, b3 = params
    B, d_in = x.shape
    h1_dim = w1.shape[1]
    h2_dim = w2.shape[1]
    A = w3.shape[1]

    C = _round_up(max(h1_dim, h2_dim, A), 8)   # common lane width of the slab
    Kx = _round_up(d_in, 8)                    # contraction width of layer 1

    packed = _pack_params(params, C, Kx)
    x_pad = x if d_in == Kx else jnp.pad(x, ((0, 0), (0, Kx - d_in)))
    act_pad = actions if A == C else jnp.pad(actions, ((0, 0), (0, C - A)))

    kernel = partial(_bc_forward_loss_kernel, B, A, Kx, C,
                     float(loss_weights[0]), float(loss_weights[1]),
                     float(loss_weights[2]))

    # No grid: everything is a single full-extent VMEM block (3 inputs, 2 outputs).
    pred_slab, losses = pl.pallas_call(
        kernel,
        out_shape=(jax.ShapeDtypeStruct((B, C), jnp.float32),   # padded pred slab
                   jax.ShapeDtypeStruct((1, 4), jnp.float32)),  # [l2, l1, cos, total]
    )(packed, x_pad, act_pad)

    pred = pred_slab[:, :A]
    return pred, losses[0, 0], losses[0, 1], losses[0, 2], losses[0, 3]


def _reference(x, params, actions, loss_weights):
    """Plain-JAX reference of the same forward, for a correctness check."""
    w1, b1, w2, b2, w3, b3 = params
    l2_w, l1_w, cos_w = loss_weights
    h1 = jnp.maximum(x @ w1 + b1, 0.0)
    h2 = jnp.maximum(h1 @ w2 + b2, 0.0)
    pred = jnp.tanh(h2 @ w3 + b3)
    diff = pred - actions
    l2 = jnp.mean(diff * diff)
    ad = jnp.abs(diff)
    l1 = jnp.mean(jnp.where(ad < 1.0, 0.5 * diff * diff, ad - 0.5))
    p3, t3 = pred[:, :3], actions[:, :3]
    eps = 1e-8
    sim = jnp.sum(p3 * t3, -1) / (jnp.maximum(jnp.linalg.norm(p3, axis=-1), eps) *
                                  jnp.maximum(jnp.linalg.norm(t3, axis=-1), eps))
    cos = jnp.mean(1.0 - sim)
    return pred, l2, l1, cos, l2_w * l2 + l1_w * l1 + cos_w * cos


if __name__ == "__main__":
    key = jax.random.PRNGKey(0)
    B = 2
    ac_dim = 7
    mlp_layer_dims = (32, 32)              # algo.actor_layer_dims
    loss_weights = (1.0, 0.1, 0.1)         # (l2_weight, l1_weight, cos_weight)

    # obs_shape_meta: two low-dim modalities -> ObservationEncoder flattens + concats
    obs_shape_meta = OrderedDict([
        ("robot0_eef_state", {"shape": [9], "type": "low_dim"}),
        ("object",           {"shape": [7], "type": "low_dim"}),
    ])

    keys = jax.random.split(key, 10)
    obs_dict = OrderedDict()
    for i, (k, v) in enumerate(obs_shape_meta.items()):
        obs_dict[k] = jax.random.normal(keys[i], (B, v["shape"][0]), dtype=jnp.float32)
    x = jnp.concatenate([obs_dict[k] for k in obs_shape_meta], axis=-1)   # [B, 16]
    d_in = x.shape[-1]

    h1, h2 = mlp_layer_dims
    w1 = 0.1 * jax.random.normal(keys[3], (d_in, h1), dtype=jnp.float32)
    b1 = 0.01 * jax.random.normal(keys[4], (1, h1), dtype=jnp.float32)
    w2 = 0.1 * jax.random.normal(keys[5], (h1, h2), dtype=jnp.float32)
    b2 = 0.01 * jax.random.normal(keys[6], (1, h2), dtype=jnp.float32)
    w3 = 0.1 * jax.random.normal(keys[7], (h2, ac_dim), dtype=jnp.float32)
    b3 = 0.01 * jax.random.normal(keys[8], (1, ac_dim), dtype=jnp.float32)
    params = (w1, b1, w2, b2, w3, b3)

    actions = jax.random.normal(keys[9], (B, ac_dim), dtype=jnp.float32)

    pred, l2, l1, cos, loss = jax.block_until_ready(
        bc_forward(x, params, actions, loss_weights))

    r_pred, r_l2, r_l1, r_cos, r_loss = _reference(x, params, actions, loss_weights)
    assert jnp.allclose(pred, r_pred, atol=1e-5)
    assert jnp.allclose(l2, r_l2, atol=1e-5)
    assert jnp.allclose(l1, r_l1, atol=1e-5)
    assert jnp.allclose(cos, r_cos, atol=1e-5)
    assert jnp.allclose(loss, r_loss, atol=1e-5)

    print("KERNEL_OK")
</pallas_src>

<mosaic_0001>
module attributes {stable_mosaic.version = 11 : i64} {
  func.func @_bc_forward_loss_kernel(%arg0: memref<104x32xf32, #tpu.memory_space<vmem>>, %arg1: memref<2x16xf32, #tpu.memory_space<vmem>>, %arg2: memref<2x32xf32, #tpu.memory_space<vmem>>, %arg3: memref<2x32xf32, #tpu.memory_space<vmem>>, %arg4: memref<1x4xf32, #tpu.memory_space<vmem>>) attributes {dimension_semantics = [], scalar_prefetch = 0 : i64, scratch_operands = 0 : i64, tpu.core_type = #tpu.core_type<tc>} {
    %c0 = arith.constant 0 : index
    %c0_0 = arith.constant 0 : index
    %0 = vector.load %arg0[%c0, %c0_0] : memref<104x32xf32, #tpu.memory_space<vmem>>, vector<16x32xf32>
    %c16 = arith.constant 16 : index
    %c0_1 = arith.constant 0 : index
    %1 = vector.load %arg0[%c16, %c0_1] : memref<104x32xf32, #tpu.memory_space<vmem>>, vector<1x32xf32>
    %c24 = arith.constant 24 : index
    %c0_2 = arith.constant 0 : index
    %2 = vector.load %arg0[%c24, %c0_2] : memref<104x32xf32, #tpu.memory_space<vmem>>, vector<32x32xf32>
    %c56 = arith.constant 56 : index
    %c0_3 = arith.constant 0 : index
    %3 = vector.load %arg0[%c56, %c0_3] : memref<104x32xf32, #tpu.memory_space<vmem>>, vector<1x32xf32>
    %c64 = arith.constant 64 : index
    %c0_4 = arith.constant 0 : index
    %4 = vector.load %arg0[%c64, %c0_4] : memref<104x32xf32, #tpu.memory_space<vmem>>, vector<32x32xf32>
    %c96 = arith.constant 96 : index
    %c0_5 = arith.constant 0 : index
    %5 = vector.load %arg0[%c96, %c0_5] : memref<104x32xf32, #tpu.memory_space<vmem>>, vector<1x32xf32>
    %c0_6 = arith.constant 0 : index
    %c0_7 = arith.constant 0 : index
    %6 = vector.load %arg1[%c0_6, %c0_7] : memref<2x16xf32, #tpu.memory_space<vmem>>, vector<2x16xf32>
    %c0_8 = arith.constant 0 : index
    %c0_9 = arith.constant 0 : index
    %7 = vector.load %arg2[%c0_8, %c0_9] : memref<2x32xf32, #tpu.memory_space<vmem>>, vector<2x32xf32>
    %cst = arith.constant dense<0.000000e+00> : vector<2x32xf32>
    %8 = tpu.matmul %6, %0, %cst {dimension_numbers = #tpu.dot_dimension_numbers<[1], [0], [0], [1], [0, 0, 1, 1], [], []>} : vector<2x16xf32>, vector<16x32xf32>, vector<2x32xf32> -> vector<2x32xf32>
    %9 = vector.broadcast %1 : vector<1x32xf32> to vector<2x32xf32>
    %10 = arith.addf %8, %9 : vector<2x32xf32>
    %cst_10 = arith.constant 0.000000e+00 : f32
    %11 = vector.broadcast %cst_10 : f32 to vector<2x32xf32>
    %12 = arith.maximumf %10, %11 : vector<2x32xf32>
    %cst_11 = arith.constant dense<0.000000e+00> : vector<2x32xf32>
    %13 = tpu.matmul %12, %2, %cst_11 {dimension_numbers = #tpu.dot_dimension_numbers<[1], [0], [0], [1], [0, 0, 1, 1], [], []>} : vector<2x32xf32>, vector<32x32xf32>, vector<2x32xf32> -> vector<2x32xf32>
    %14 = vector.broadcast %3 : vector<1x32xf32> to vector<2x32xf32>
    %15 = arith.addf %13, %14 : vector<2x32xf32>
    %cst_12 = arith.constant 0.000000e+00 : f32
    %16 = vector.broadcast %cst_12 : f32 to vector<2x32xf32>
    %17 = arith.maximumf %15, %16 : vector<2x32xf32>
    %cst_13 = arith.constant dense<0.000000e+00> : vector<2x32xf32>
    %18 = tpu.matmul %17, %4, %cst_13 {dimension_numbers = #tpu.dot_dimension_numbers<[1], [0], [0], [1], [0, 0, 1, 1], [], []>} : vector<2x32xf32>, vector<32x32xf32>, vector<2x32xf32> -> vector<2x32xf32>
    %19 = vector.broadcast %5 : vector<1x32xf32> to vector<2x32xf32>
    %20 = arith.addf %18, %19 : vector<2x32xf32>
    %21 = math.tanh %20 : vector<2x32xf32>
    %c0_14 = arith.constant 0 : index
    %c0_15 = arith.constant 0 : index
    %22 = vector.load %arg3[%c0_14, %c0_15] : memref<2x32xf32, #tpu.memory_space<vmem>>, vector<2x32xf32>
    tpu.vector_store %arg3[%c0_14, %c0_15], %21 {strides = array<i32>} : memref<2x32xf32, #tpu.memory_space<vmem>>, vector<2x32xf32>,
    %23 = arith.subf %21, %7 : vector<2x32xf32>
    %24 = arith.mulf %23, %23 : vector<2x32xf32>
    %25 = vector.shape_cast %24 : vector<2x32xf32> to vector<1x2x32xf32>
    %cst_16 = arith.constant dense<0.000000e+00> : vector<1xf32>
    %26 = vector.multi_reduction <add>, %25, %cst_16 [1, 2] : vector<1x2x32xf32> to vector<1xf32>
    %27 = vector.shape_cast %26 : vector<1xf32> to vector<1x1x1xf32>
    %28 = vector.extract %27[0, 0, 0] : f32 from vector<1x1x1xf32>
    %29 = vector.broadcast %28 : f32 to vector<1x1xf32>
    %cst_17 = arith.constant 0.0714285746 : f32
    %30 = vector.broadcast %cst_17 : f32 to vector<1x1xf32>
    %31 = arith.mulf %29, %30 : vector<1x1xf32>
    %32 = math.absf %23 : vector<2x32xf32>
    %cst_18 = arith.constant 1.000000e+00 : f32
    %33 = vector.broadcast %cst_18 : f32 to vector<2x32xf32>
    %34 = arith.cmpf olt, %32, %33 : vector<2x32xf32>
    %cst_19 = arith.constant 5.000000e-01 : f32
    %35 = vector.broadcast %cst_19 : f32 to vector<2x32xf32>
    %36 = arith.mulf %35, %23 : vector<2x32xf32>
    %37 = arith.mulf %36, %23 : vector<2x32xf32>
    %cst_20 = arith.constant 5.000000e-01 : f32
    %38 = vector.broadcast %cst_20 : f32 to vector<2x32xf32>
    %39 = arith.subf %32, %38 : vector<2x32xf32>
    %40 = arith.select %34, %37, %39 : vector<2x32xi1>, vector<2x32xf32>
    %41 = vector.shape_cast %40 : vector<2x32xf32> to vector<1x2x32xf32>
    %cst_21 = arith.constant dense<0.000000e+00> : vector<1xf32>
    %42 = vector.multi_reduction <add>, %41, %cst_21 [1, 2] : vector<1x2x32xf32> to vector<1xf32>
    %43 = vector.shape_cast %42 : vector<1xf32> to vector<1x1x1xf32>
    %44 = vector.extract %43[0, 0, 0] : f32 from vector<1x1x1xf32>
    %45 = vector.broadcast %44 : f32 to vector<1x1xf32>
    %cst_22 = arith.constant 0.0714285746 : f32
    %46 = vector.broadcast %cst_22 : f32 to vector<1x1xf32>
    %47 = arith.mulf %45, %46 : vector<1x1xf32>
    %48 = tpu.iota {dimensions = array<i32: 1>} : vector<2x32xi32>
    %c3_i32 = arith.constant 3 : i32
    %49 = vector.broadcast %c3_i32 : i32 to vector<2x32xi32>
    %50 = arith.cmpi slt, %48, %49 : vector<2x32xi32>
    %51 = arith.mulf %21, %7 : vector<2x32xf32>
    %cst_23 = arith.constant 0.000000e+00 : f32
    %52 = vector.broadcast %cst_23 : f32 to vector<2x32xf32>
    %53 = arith.select %50, %51, %52 : vector<2x32xi1>, vector<2x32xf32>
    %cst_24 = arith.constant dense<0.000000e+00> : vector<2xf32>
    %54 = vector.multi_reduction <add>, %53, %cst_24 [1] : vector<2x32xf32> to vector<2xf32>
    %55 = vector.shape_cast %54 : vector<2xf32> to vector<2x1xf32>
    %56 = arith.mulf %21, %21 : vector<2x32xf32>
    %cst_25 = arith.constant 0.000000e+00 : f32
    %57 = vector.broadcast %cst_25 : f32 to vector<2x32xf32>
    %58 = arith.select %50, %56, %57 : vector<2x32xi1>, vector<2x32xf32>
    %cst_26 = arith.constant dense<0.000000e+00> : vector<2xf32>
    %59 = vector.multi_reduction <add>, %58, %cst_26 [1] : vector<2x32xf32> to vector<2xf32>
    %60 = vector.shape_cast %59 : vector<2xf32> to vector<2x1xf32>
    %61 = arith.mulf %7, %7 : vector<2x32xf32>
    %cst_27 = arith.constant 0.000000e+00 : f32
    %62 = vector.broadcast %cst_27 : f32 to vector<2x32xf32>
    %63 = arith.select %50, %61, %62 : vector<2x32xi1>, vector<2x32xf32>
    %cst_28 = arith.constant dense<0.000000e+00> : vector<2xf32>
    %64 = vector.multi_reduction <add>, %63, %cst_28 [1] : vector<2x32xf32> to vector<2xf32>
    %65 = vector.shape_cast %64 : vector<2xf32> to vector<2x1xf32>
    %cst_29 = arith.constant 1.000000e-16 : f32
    %66 = vector.broadcast %cst_29 : f32 to vector<2x1xf32>
    %67 = arith.maximumf %60, %66 : vector<2x1xf32>
    %68 = math.rsqrt %67 : vector<2x1xf32>
    %69 = arith.mulf %55, %68 : vector<2x1xf32>
    %cst_30 = arith.constant 1.000000e-16 : f32
    %70 = vector.broadcast %cst_30 : f32 to vector<2x1xf32>
    %71 = arith.maximumf %65, %70 : vector<2x1xf32>
    %72 = math.rsqrt %71 : vector<2x1xf32>
    %73 = arith.mulf %69, %72 : vector<2x1xf32>
    %cst_31 = arith.constant 1.000000e+00 : f32
    %74 = vector.broadcast %cst_31 : f32 to vector<2x1xf32>
    %75 = arith.subf %74, %73 : vector<2x1xf32>
    %76 = vector.shape_cast %75 : vector<2x1xf32> to vector<1x2x1xf32>
    %cst_32 = arith.constant dense<0.000000e+00> : vector<1xf32>
    %77 = vector.multi_reduction <add>, %76, %cst_32 [1, 2] : vector<1x2x1xf32> to vector<1xf32>
    %78 = vector.shape_cast %77 : vector<1xf32> to vector<1x1x1xf32>
    %79 = vector.extract %78[0, 0, 0] : f32 from vector<1x1x1xf32>
    %80 = vector.broadcast %79 : f32 to vector<1x1xf32>
    %cst_33 = arith.constant 5.000000e-01 : f32
    %81 = vector.broadcast %cst_33 : f32 to vector<1x1xf32>
    %82 = arith.mulf %80, %81 : vector<1x1xf32>
    %cst_34 = arith.constant 1.000000e+00 : f32
    %83 = vector.broadcast %cst_34 : f32 to vector<1x1xf32>
    %84 = arith.mulf %83, %31 : vector<1x1xf32>
    %cst_35 = arith.constant 1.000000e-01 : f32
    %85 = vector.broadcast %cst_35 : f32 to vector<1x1xf32>
    %86 = arith.mulf %85, %47 : vector<1x1xf32>
    %87 = arith.addf %84, %86 : vector<1x1xf32>
    %cst_36 = arith.constant 1.000000e-01 : f32
    %88 = vector.broadcast %cst_36 : f32 to vector<1x1xf32>
    %89 = arith.mulf %88, %82 : vector<1x1xf32>
    %90 = arith.addf %87, %89 : vector<1x1xf32>
    %91 = tpu.iota {dimensions = array<i32: 1>} : vector<1x4xi32>
    %c0_i32 = arith.constant 0 : i32
    %92 = vector.broadcast %c0_i32 : i32 to vector<1x4xi32>
    %93 = arith.cmpi eq, %91, %92 : vector<1x4xi32>
    %cst_37 = arith.constant 0.000000e+00 : f32
    %94 = vector.shape_cast %31 : vector<1x1xf32> to vector<1x1xf32>
    %95 = vector.broadcast %94 : vector<1x1xf32> to vector<1x4xf32>
    %96 = vector.broadcast %cst_37 : f32 to vector<1x4xf32>
    %97 = arith.select %93, %95, %96 : vector<1x4xi1>, vector<1x4xf32>
    %c1_i32 = arith.constant 1 : i32
    %98 = vector.broadcast %c1_i32 : i32 to vector<1x4xi32>
    %99 = arith.cmpi eq, %91, %98 : vector<1x4xi32>
    %cst_38 = arith.constant 0.000000e+00 : f32
    %100 = vector.shape_cast %47 : vector<1x1xf32> to vector<1x1xf32>
    %101 = vector.broadcast %100 : vector<1x1xf32> to vector<1x4xf32>
    %102 = vector.broadcast %cst_38 : f32 to vector<1x4xf32>
    %103 = arith.select %99, %101, %102 : vector<1x4xi1>, vector<1x4xf32>
    %104 = arith.addf %97, %103 : vector<1x4xf32>
    %c2_i32 = arith.constant 2 : i32
    %105 = vector.broadcast %c2_i32 : i32 to vector<1x4xi32>
    %106 = arith.cmpi eq, %91, %105 : vector<1x4xi32>
    %cst_39 = arith.constant 0.000000e+00 : f32
    %107 = vector.shape_cast %82 : vector<1x1xf32> to vector<1x1xf32>
    %108 = vector.broadcast %107 : vector<1x1xf32> to vector<1x4xf32>
    %109 = vector.broadcast %cst_39 : f32 to vector<1x4xf32>
    %110 = arith.select %106, %108, %109 : vector<1x4xi1>, vector<1x4xf32>
    %111 = arith.addf %104, %110 : vector<1x4xf32>
    %c3_i32_40 = arith.constant 3 : i32
    %112 = vector.broadcast %c3_i32_40 : i32 to vector<1x4xi32>
    %113 = arith.cmpi eq, %91, %112 : vector<1x4xi32>
    %cst_41 = arith.constant 0.000000e+00 : f32
    %114 = vector.shape_cast %90 : vector<1x1xf32> to vector<1x1xf32>
    %115 = vector.broadcast %114 : vector<1x1xf32> to vector<1x4xf32>
    %116 = vector.broadcast %cst_41 : f32 to vector<1x4xf32>
    %117 = arith.select %113, %115, %116 : vector<1x4xi1>, vector<1x4xf32>
    %118 = arith.addf %111, %117 : vector<1x4xf32>
    %c0_42 = arith.constant 0 : index
    %c0_43 = arith.constant 0 : index
    %119 = vector.load %arg4[%c0_42, %c0_43] : memref<1x4xf32, #tpu.memory_space<vmem>>, vector<1x4xf32>
    tpu.vector_store %arg4[%c0_42, %c0_43], %118 {strides = array<i32>} : memref<1x4xf32, #tpu.memory_space<vmem>>, vector<1x4xf32>,
    return
  }
}

</mosaic_0001>

<bundles_post_ra>
// kernel: tpu_custom_call.1
= control target key start
LH: loop header
LB: loop body
LE: loop exit
PB: predicated region body
PF: predicated region fallthrough
CT: control target
= control target key end

     0   :  { %10 = vsyncpa [#allocation3], 0  ;;  %v515_v2 = vmov 0.0|0.0   ;;  %vm516_vm0 = vmmov 0   ;;  %v517_v4 = vmov 0.0   ;;  %s630_s0 = inlined_call_operand.vmem [shape: f32[104,32], index: 0, kind: input, shape index: {}]   ;;  %s631_s1 = inlined_call_operand.vmem [shape: f32[2,16], index: 1, kind: input, shape index: {}]   ;;  %s632_s2 = inlined_call_operand.vmem [shape: f32[2,32], index: 2, kind: input, shape index: {}]   ;;  %s633_s3 = inlined_call_operand.hbm [shape: f32[2,32], index: 3, kind: output, shape index: {0}]   ;;  %s634_s4 = inlined_call_operand.hbm [shape: f32[1,4], index: 4, kind: output, shape index: {1}]  }
   0x1   :  { %v18_v0 = vld [vmem:[%s630_s0] sm:$0xff]  ;;  %v19_v1 = vld [vmem:[%s630_s0 + $0x8] sm:$0xff]  ;;  %435 = vmatprep.subr.bf16.mxu0 %v515_v2  ;;  %410 = vmatprep.mubr.msk.f32.mxu0 %vm516_vm0, %v517_v4  ;;  %v21_v5 = vld [vmem:[%s630_s0 + $0x18] sm:$0xff] }
   0x2   :  { %v436_v3 = vpack.c.bf16 %v19_v1, %v18_v0  ;;  %v22_v6 = vld [vmem:[%s630_s0 + $0x20] sm:$0xff]  ;;  %438 = vmatprep.subr.bf16.mxu1 %v515_v2  ;;  %421 = vmatprep.mubr.msk.f32.mxu1 %vm516_vm0, %v517_v4 }
   0x3   :  { %v439_v7 = vpack.c.bf16 %v22_v6, %v21_v5 }
   0x4   :  { %11 = vsyncpa [#allocation5], 0  ;;  %437 = vmatpush3.bf16.msra.mxu0 %v436_v3  ;;  %v31_v8 = vld [vmem:[%s631_s1] sm:$0x3]  ;;  %vm37_vm1 = vcmask 130048   ;;  %v23_v9 = vld [vmem:[%s630_s0 + $0x28] sm:$0xff]  ;;  %v303_v32 = vlaneseq }
   0x5   :  { %440 = vmatpush3.bf16.msra.mxu1 %v439_v7  ;;  %444 = vmatprep.subr.bf16.mxu0 %v515_v2  ;;  %v24_v10 = vld [vmem:[%s630_s0 + $0x30] sm:$0xff]  ;;  %v26_v12 = vld [vmem:[%s630_s0 + $0x40] sm:$0xff]  ;;  %v27_v13 = vld [vmem:[%s630_s0 + $0x48] sm:$0xff]  ;;  %vm116_vm2 = vcmask 261120   ;;  %vm269_vm3 = vcmask 254976   ;;  %vm328_vm6 = vcmask 1024  }
   0x6   :  { %441 = vmatprep.subr.bf16.mxu1 %v515_v2  ;;  %v442_v11 = vpack.c.bf16 %v24_v10, %v23_v9  ;;  %v445_v14 = vpack.c.bf16 %v27_v13, %v26_v12  ;;  %v386_v15 = vld [vmem:[%s630_s0 + $0x10] ss:$0 sm:$0xff]  ;;  %v29_v21 = vld [vmem:[%s630_s0 + $0x58] sm:$0xff]  ;;  %v390_v28 = vld [vmem:[%s630_s0 + $0x60] ss:$0 sm:$0xff]  ;;  %v590_v33 = vand.u32 127, %v303_v32 }
   0x7   :  { %411 = vmatmul.mubr.msk.f32.vlgmr.msra.gmra.mrb[0].mxu0 %vm37_vm1, %v31_v8  ;;  %v28_v20 = vld [vmem:[%s630_s0 + $0x50] sm:$0xff]  ;;  %v388_v23 = vld [vmem:[%s630_s0 + $0x38] ss:$0 sm:$0xff]  ;;  %v32_v34 = vld [vmem:[%s632_s2] sm:$0x3]  ;;  %s518_s0 = smov [#allocation2]  }
   0x8   :  { %432 = vmatprep.mubr.msk.f32.mxu0 %vm516_vm0, %v517_v4  ;;  %446 = vmatpush3.bf16.msra.mxu0 %v445_v14  ;;  %v448_v22 = vpack.c.bf16 %v29_v21, %v28_v20  ;;  %v316_v35 = vmul.f32 %v32_v34, %v32_v34  ;;  %vm305_vm4 = vcmp.lt.s32.totalorder %v590_v33, 3  ;;  %s364_s2 = sshll.u32 %s518_s0, 4  ;;  %s365_s2 = int_to_ptr.vmem [resolvable:$true] %s364_s2 }
   0x9   :  { %443 = vmatpush3.bf16.msra.mxu1 %v442_v11  ;;  %447 = vmatprep.subr.bf16.mxu0 %v515_v2  ;;  %s467_s18 = scalar_lea.vmem %s365_s2, 32  ;;  %p472_p1 = scmp.lt.s32.totalorder %s365_s2, %s365_s2 }
   0xa   :  { %v317_v42 = vsel %vm305_vm4, %v316_v35, 0.0  ;;  %p468_p0 = scmp.ne.s32.totalorder %s365_s2, %s467_s18  ;;  %p473_p2 = scmp.lt.s32.totalorder %s467_s18, %s467_s18 }
   0xb   :  { %v318_v49 = vsel %vm269_vm3, %v317_v42, 0.0 }
   0xc   :  { %449 = vmatpush3.bf16.msra.mxu0 %v448_v22  ;;  %p474_p3 = por %p473_p2, %p472_p1 }
   0xe   :  { %p475_p4 = pnand %p474_p3, %p468_p0 }
  0xda   :  { %v107_v16 = vpop.f32.mrb[0].mxu0 }
  0xdb   :  { %v108_v17 = vadd.f32 %v386_v15, %v107_v16  ;;  %v412_v18 = vpop.f32.mrb[1].mxu0 }
  0xdd   :  { %v111_v19 = vmax.f32 %v108_v17, 0.0 }
  0xdf   :  { %422 = vmatmul.mubr.msk.f32.vlgmr.msra.gmra.mrb[0].mxu1 %vm116_vm2, %v111_v19 }
 0x1b2   :  { %v186_v24 = vpop.f32.mrb[0].mxu1 }
 0x1b3   :  { %v187_v25 = vadd.f32 %v388_v23, %v186_v24  ;;  %v423_v26 = vpop.f32.mrb[1].mxu1 }
 0x1b5   :  { %v190_v27 = vmax.f32 %v187_v25, 0.0 }
 0x1b7   :  { %433 = vmatmul.mubr.msk.f32.vlgmr.msra.gmra.mrb[2].mxu0 %vm116_vm2, %v190_v27 }
 0x28a   :  { %v264_v29 = vpop.f32.mrb[2].mxu0 }
 0x28b   :  { %v265_v30 = vadd.f32 %v390_v28, %v264_v29  ;;  %v434_v31 = vpop.f32.mrb[3].mxu0 }
 0x28d   :  { %461 = vtanh.f32 %v265_v30 }
 0x297   :  { %v462_v36 = vpop.eup %461 }
 0x298   :  { %v311_v37 = vmul.f32 %v462_v36, %v462_v36  ;;  %270 = vst.msk [vmem:[#allocation2] sm:$0x3] %vm269_vm3, %v462_v36  ;;  %v306_v38 = vmul.f32 %v462_v36, %v32_v34  ;;  %v271_v39 = vsub.f32 %v462_v36, %v32_v34 }
 0x29a   :  { %v312_v40 = vsel %vm305_vm4, %v311_v37, 0.0  ;;  %v307_v41 = vsel %vm305_vm4, %v306_v38, 0.0  ;;  %v285_v43 = vand.u32 2147483647, %v271_v39  ;;  %v272_v46 = vmul.f32 %v271_v39, %v271_v39 }
 0x29b   :  { %v313_v44 = vsel %vm269_vm3, %v312_v40, 0.0  ;;  %v308_v45 = vsel %vm269_vm3, %v307_v41, 0.0  ;;  %v287_v47 = vmul.f32 0.5, %v271_v39 }
 0x29c   :  { %314 = vadd.xlane.f32.xlu0 %v313_v44  ;;  %309 = vadd.xlane.f32.xlu1 %v308_v45  ;;  %v392_v48 = vadd.f32 -0.5, %v285_v43  ;;  %vm286_vm5 = vcmp.lt.f32.partialorder %v285_v43, 1.0  ;;  %v273_v51 = vsel %vm269_vm3, %v272_v46, 0.0 }
 0x29d   :  { %v288_v50 = vmul.f32 %v287_v47, %v271_v39 }
 0x29f   :  { %v290_v52 = vsel %vm286_vm5, %v288_v50, %v392_v48 }
 0x2a0   :  { %319 = vadd.xlane.f32.xlu0 %v318_v49  ;;  %274 = vadd.xlane.f32.xlu1 %v273_v51  ;;  %v291_v53 = vsel %vm269_vm3, %v290_v52, 0.0 }
 0x2a4   :  { %292 = vadd.xlane.f32.xlu0 %v291_v53 }
 0x329   :  { %v315_v54 = vpop.xlane.xlu0 %314  ;;  %v310_v55 = vpop.xlane.xlu1 %309 }
 0x32a   :  { %v321_v56 = vmax.f32 %v315_v54, 1e-16 }
 0x32c   :  { %463 = vrsqrt.f32 %v321_v56 }
 0x32d   :  { %v320_v57 = vpop.xlane.xlu0 %319  ;;  %v275_v58 = vpop.xlane.xlu1 %274 }
 0x32e   :  { %v324_v59 = vmax.f32 %v320_v57, 1e-16  ;;  %v276_v60 = vrot.slane %v275_v58, 4 }
 0x330   :  { %465 = vrsqrt.f32 %v324_v59  ;;  %v277_v61 = vadd.f32 %v276_v60, %v275_v58 }
 0x331   :  { %v293_v62 = vpop.xlane.xlu0 %292 }
 0x332   :  { %v278_v63 = vrot.slane %v277_v61, 2  ;;  %v294_v0 = vrot.slane %v293_v62, 4 }
 0x334   :  { %v295_v1 = vadd.f32 %v294_v0, %v293_v62  ;;  %v279_v2 = vadd.f32 %v278_v63, %v277_v61 }
 0x336   :  { %v464_v3 = vpop.eup %463  ;;  %v296_v4 = vrot.slane %v295_v1, 2  ;;  %v280_v5 = vrot.slane %v279_v2, 1 }
 0x337   :  { %v323_v8 = vmul.f32 %v464_v3, %v310_v55 }
 0x338   :  { %v297_v6 = vadd.f32 %v296_v4, %v295_v1  ;;  %v281_v7 = vadd.f32 %v280_v5, %v279_v2 }
 0x33a   :  { %v466_v9 = vpop.eup %465  ;;  %450 = vpush %v281_v7  ;;  %v298_v10 = vrot.slane %v297_v6, 1 }
 0x33b   :  { %v326_v11 = vmul.f32 %v466_v9, %v323_v8 }
 0x33c   :  { %v299_v12 = vadd.f32 %v298_v10, %v297_v6 }
 0x33d   :  { %v327_v13 = vsub.f32 1.0, %v326_v11 }
 0x33e   :  { %452 = vpush %v299_v12 }
 0x33f   :  { %v329_v14 = vsel %vm328_vm6, %v327_v13, 0.0 }
 0x340   :  { %330 = vadd.xlane.f32.xlu1 %v329_v14 }
 0x341   :  { %478 = shalt.err (!%p475_p4)
}
 0x342   :  { %s479_s21 = scalar_lea.hbm %s633_s3, 32 }
 0x343   :  { %p480_p5 = scmp.ne.s32.totalorder %s633_s3, %s479_s21  ;;  %p483_p6 = scmp.lt.u32.totalorder %s479_s21, %s633_s3 }
 0x345   :  { %p485_p7 = pnand %p483_p6, %p480_p5 }
 0x347   :  { %488 = shalt.err (!%p485_p7)
}
 0x348   :  { %367 = dma.vmem_to_hbm [thread:$0]  %s365_s2, 32, %s633_s3, [#allocation3]   ;;  %vm347_vm7 = vcmp.eq.s32.totalorder %v590_v33, 1  ;;  %vm345_vm8 = vcmp.eq.s32.totalorder %v590_v33, 0  ;;  %vm350_vm9 = vcmp.eq.s32.totalorder %v590_v33, 2  ;;  %vm353_vm10 = vcmp.eq.s32.totalorder %v590_v33, 3 }
 0x349   :  { %s519_s3 = smov [#allocation4]   ;;  %vm356_vm11 = vcmask 24576  }
 0x34a   :  { %s374_s1 = sshll.u32 %s519_s3, 4  ;;  %s375_s1 = int_to_ptr.vmem [resolvable:$true] %s374_s1 }
 0x34b   :  { %s489_s5 = scalar_lea.vmem %s375_s1, 16  ;;  %s493_s6 = scalar_lea.vmem %s375_s1, 32 }
 0x34c   :  { %p490_p8 = scmp.ne.s32.totalorder %s375_s1, %s489_s5  ;;  %p494_p9 = scmp.lt.s32.totalorder %s375_s1, %s375_s1 }
 0x34d   :  { %p495_p10 = scmp.lt.s32.totalorder %s493_s6, %s489_s5 }
 0x34f   :  { %p496_p11 = por %p495_p10, %p494_p9 }
 0x351   :  { %p497_p12 = pnand %p496_p11, %p490_p8 }
 0x36b   :  { %s451_s28 = spop %450 }
 0x36c   :  { %v283_v24 = vstv %s451_s28 }
 0x36d   :  { %v284_v25 = vmul.f32 0.071428575, %v283_v24 }
 0x36f   :  { %s453_s29 = spop %452  ;;  %v346_v30 = vsel %vm345_vm8, %v284_v25, 0.0 }
 0x370   :  { %v301_v22 = vstv %s453_s29 }
 0x371   :  { %v302_v23 = vmul.f32 0.071428575, %v301_v22 }
 0x373   :  { %v341_v26 = vmul.f32 0.1, %v302_v23  ;;  %v348_v28 = vsel %vm347_vm7, %v302_v23, 0.0 }
 0x374   :  { %v349_v35 = vadd.f32 %v348_v28, %v346_v30 }
 0x375   :  { %v342_v31 = vadd.f32 %v341_v26, %v284_v25 }
 0x3cd   :  { %v331_v15 = vpop.xlane.xlu1 %330 }
 0x3ce   :  { %v332_v16 = vrot.slane %v331_v15, 4 }
 0x3d0   :  { %v333_v17 = vadd.f32 %v332_v16, %v331_v15 }
 0x3d2   :  { %v334_v18 = vrot.slane %v333_v17, 2 }
 0x3d4   :  { %v335_v19 = vadd.f32 %v334_v18, %v333_v17 }
 0x3d6   :  { %v336_v20 = vrot.slane %v335_v19, 1 }
 0x3d8   :  { %v337_v21 = vadd.f32 %v336_v20, %v335_v19 }
 0x3da   :  { %454 = vpush %v337_v21 }
 0x40b   :  { %s455_s30 = spop %454 }
 0x40c   :  { %v339_v27 = vstv %s455_s30 }
 0x40d   :  { %v340_v29 = vmul.f32 0.5, %v339_v27 }
 0x40f   :  { %v343_v32 = vmul.f32 0.1, %v340_v29  ;;  %v351_v34 = vsel %vm350_vm9, %v340_v29, 0.0 }
 0x410   :  { %v352_v37 = vadd.f32 %v351_v34, %v349_v35 }
 0x411   :  { %v344_v36 = vadd.f32 %v343_v32, %v342_v31 }
 0x413   :  { %v354_v38 = vsel %vm353_vm10, %v344_v36, 0.0 }
 0x414   :  { %v355_v39 = vadd.f32 %v354_v38, %v352_v37 }
 0x416   :  { %357 = vst.msk [vmem:[#allocation4] sm:$0x1] %vm356_vm11, %v355_v39 }
 0x417   :  { %500 = shalt.err (!%p497_p12)
}
 0x418   :  { %s501_s9 = scalar_lea.hbm %s634_s4, 16 }
 0x419   :  { %p502_p13 = scmp.ne.s32.totalorder %s634_s4, %s501_s9  ;;  %p505_p0 = scmp.lt.u32.totalorder %s501_s9, %s634_s4 }
 0x41b   :  { %p507_p1 = pnand %p505_p0, %p502_p13 }
 0x41d   :  { %510 = shalt.err (!%p507_p1)
}
 0x41e   :  { %377 = dma.vmem_to_hbm [thread:$0]  %s375_s1, 16, %s634_s4, [#allocation5]  }
 0x41f   :  { %511 = dma.done.wait [#allocation3], 32  }
 0x420   :  { %512 = vsyncadd [#allocation3], 4294967264 }
 0x421   :  { %513 = dma.done.wait [#allocation5], 16  }
 0x422   :  { %514 = vsyncadd [#allocation5], 4294967280 }
 0x423   :  { %384 = vsyncpa [#allocation3], 1 }
 0x424   :  { %385 = vsyncpa [#allocation5], 1 }

</bundles_post_ra>
